<compile_context>
chip_gen: v7x
topology: tpu7x:2x2x1
jax: 0.10.0
libtpu: 0.0.40
codegen_flags: <defaults>
</compile_context>

<pallas_src>
import jax
import jax.numpy as jnp
from jax.experimental import pallas as pl
from jax.experimental.pallas import tpu as pltpu

_LANES = 128          # vreg lane width (fast axis)
_SUBLANES = 8         # f32 sublane granularity
_CHUNK = _SUBLANES * _LANES      # minimal padding granularity: 1024 elements
_MAX_TILE_ROWS = 4096            # 4096 x 128 x 4B = 2 MiB per block buffer


def _round_up(n, m):
    return ((n + m - 1) // m) * m


def _affine_kernel(x_ref, w_ref, b_ref, o_ref):
    # w_ref / b_ref are (1, 1) scalars in SMEM; x/o are lane-dense VMEM tiles.
    w = w_ref[0, 0]
    b = b_ref[0, 0]
    o_ref[...] = x_ref[...] * w + b


def regression_module_forward(x, weight, bias, *, min_pallas_elements=100_000):
    """Pallas equivalent of nn.Sequential(nn.Linear(1, 1)).forward(x).

    x:      (batch, 1) float32
    weight: (1, 1)     float32   (PyTorch Linear weight, out x in)
    bias:   (1,)       float32
    returns (batch, 1) float32
    """
    batch, in_features = x.shape
    assert in_features == 1, "RegressionModule expects in_features == 1"

    x = x.astype(jnp.float32)
    w = weight.reshape(()).astype(jnp.float32)
    b = bias.reshape(()).astype(jnp.float32)

    # Small/medium batches: a single fused XLA elementwise op (one read, one
    # write, no wrapper copies) beats the custom-call + per-step overhead.
    if batch < min_pallas_elements:
        return x * w + b

    # ---- Minimal-padding lane-dense slab: (batch, 1) -> (padded_rows, 128) --
    rows = pl.cdiv(batch, _LANES)
    padded_rows = _round_up(rows, _SUBLANES)   # pad only to an 8x128 boundary
    pad = padded_rows * _LANES - batch         # < _CHUNK (1024) elements

    x_flat = x.reshape(-1)                     # (batch,1)->(batch,): free
    if pad:
        # <1024 elements of slack; zero-copy when batch is 1024-aligned.
        x_flat = jnp.pad(x_flat, (0, pad))
    x2d = x_flat.reshape(padded_rows, _LANES)

    # Tile selection: big tiles for HBM-roofline streaming, capped for VMEM;
    # guarantee >=2 grid steps so v7x's two TensorCores both participate.
    if padded_rows <= _MAX_TILE_ROWS:
        tile_rows = max(_SUBLANES,
                        _round_up(pl.cdiv(padded_rows, 2), _SUBLANES))
    else:
        tile_rows = _MAX_TILE_ROWS
    grid = pl.cdiv(padded_rows, tile_rows)     # ragged last block is masked

    w_smem = w.reshape(1, 1)
    b_smem = b.reshape(1, 1)

    out2d = pl.pallas_call(
        _affine_kernel,
        out_shape=jax.ShapeDtypeStruct((padded_rows, _LANES), jnp.float32),
        grid_spec=pltpu.PrefetchScalarGridSpec(
            num_scalar_prefetch=0,
            grid=(grid,),
            in_specs=[
                pl.BlockSpec((tile_rows, _LANES), lambda i: (i, 0)),
                pl.BlockSpec(memory_space=pltpu.SMEM),
                pl.BlockSpec(memory_space=pltpu.SMEM),
            ],
            out_specs=pl.BlockSpec((tile_rows, _LANES), lambda i: (i, 0)),
        ),
        compiler_params=pltpu.CompilerParams(
            # Batch tiles are fully independent -> shard across TCs on v7x.
            dimension_semantics=("parallel",),
            # Explicit limit: >= v5e's 16 MiB default, <= v7x's 32 MiB scoped.
            vmem_limit_bytes=32 * 1024 * 1024,
        ),
    )(x2d, w_smem, b_smem)

    out_flat = out2d.reshape(-1)
    if pad:
        out_flat = out_flat[:batch]            # identity (no copy) when pad==0
    return out_flat.reshape(batch, 1)


if __name__ == "__main__":
    key = jax.random.PRNGKey(0)
    k_x, k_w, k_b = jax.random.split(key, 3)

    # Deterministic params mimicking PyTorch's Linear default init (fan_in=1).
    weight = jax.random.uniform(k_w, (1, 1), minval=-1.0, maxval=1.0,
                                dtype=jnp.float32)
    bias = jax.random.uniform(k_b, (1,), minval=-1.0, maxval=1.0,
                              dtype=jnp.float32)

    # 1) Unaligned batch: exercises minimal padding (48 elements), grid=2,
    #    ragged last block, ~0.5 MiB of f32.
    batch = 130000
    x = jax.random.normal(k_x, (batch, 1), dtype=jnp.float32)
    y = regression_module_forward(x, weight, bias)
    jax.block_until_ready(y)
    y_ref = x @ weight.T + bias
    assert y.shape == (batch, 1)
    assert jnp.allclose(y, y_ref, atol=1e-5), "mismatch (pallas, ragged path)"

    # 2) Aligned batch: zero-copy wrapper (no pad, no output slice), two full
    #    _MAX_TILE_ROWS tiles, ~4 MiB of f32.
    batch2 = _MAX_TILE_ROWS * _LANES * 2
    x2 = jax.random.normal(k_x, (batch2, 1), dtype=jnp.float32)
    y2 = regression_module_forward(x2, weight, bias)
    jax.block_until_ready(y2)
    assert y2.shape == (batch2, 1)
    assert jnp.allclose(y2, x2 @ weight.T + bias, atol=1e-5), \
        "mismatch (pallas, aligned path)"

    # 3) Tiny batch: dispatches to the fused XLA path (custom-call overhead
    #    would dominate a scalar FMA at this size).
    x_small = x[:8]
    y_small = regression_module_forward(x_small, weight, bias)
    jax.block_until_ready(y_small)
    assert y_small.shape == (8, 1)
    assert jnp.allclose(y_small, x_small @ weight.T + bias, atol=1e-6), \
        "mismatch (small-batch path)"

    print("KERNEL_OK")
</pallas_src>

<mosaic_0001>
module attributes {stable_mosaic.version = 11 : i64} {
  func.func @_affine_kernel(%arg0: i32, %arg1: memref<512x128xf32, #tpu.memory_space<vmem>>, %arg2: memref<1x1xf32, #tpu.memory_space<smem>>, %arg3: memref<1x1xf32, #tpu.memory_space<smem>>, %arg4: memref<512x128xf32, #tpu.memory_space<vmem>>) attributes {dimension_semantics = [#tpu.dimension_semantics<parallel>], iteration_bounds = array<i64: 2>, scalar_prefetch = 0 : i64, scratch_operands = 0 : i64, tpu.core_type = #tpu.core_type<tc>, window_params = [{transform_indices = @transform_0, window_bounds = array<i64: 512, 128>}, {transform_indices = @transform_1, window_bounds = array<i64: 1, 1>}, {transform_indices = @transform_2, window_bounds = array<i64: 1, 1>}, {transform_indices = @transform_3, window_bounds = array<i64: 512, 128>}]} {
    %c0 = arith.constant 0 : index
    %c0_0 = arith.constant 0 : index
    %0 = memref.load %arg2[%c0, %c0_0] : memref<1x1xf32, #tpu.memory_space<smem>>
    %c0_1 = arith.constant 0 : index
    %c0_2 = arith.constant 0 : index
    %1 = memref.load %arg3[%c0_1, %c0_2] : memref<1x1xf32, #tpu.memory_space<smem>>
    %c0_3 = arith.constant 0 : index
    %c0_4 = arith.constant 0 : index
    %2 = vector.load %arg1[%c0_3, %c0_4] : memref<512x128xf32, #tpu.memory_space<vmem>>, vector<512x128xf32>
    %3 = vector.broadcast %0 : f32 to vector<512x128xf32>
    %4 = arith.mulf %2, %3 : vector<512x128xf32>
    %5 = vector.broadcast %1 : f32 to vector<512x128xf32>
    %6 = arith.addf %4, %5 : vector<512x128xf32>
    %c0_5 = arith.constant 0 : index
    %c0_6 = arith.constant 0 : index
    %7 = vector.load %arg4[%c0_5, %c0_6] : memref<512x128xf32, #tpu.memory_space<vmem>>, vector<512x128xf32>
    tpu.vector_store %arg4[%c0_5, %c0_6], %6 {strides = array<i32>} : memref<512x128xf32, #tpu.memory_space<vmem>>, vector<512x128xf32>,
    return
  }
  func.func @transform_0(%arg0: i32) -> (i32, i32) {
    %c0_i32 = arith.constant 0 : i32
    %c0_i32_0 = arith.constant 0 : i32
    return %arg0, %c0_i32 : i32, i32
  }
  func.func @transform_1(%arg0: i32) -> (i32, i32) {
    %c0_i32 = arith.constant 0 : i32
    %c0_i32_0 = arith.constant 0 : i32
    %c0_i32_1 = arith.constant 0 : i32
    return %c0_i32, %c0_i32_0 : i32, i32
  }
  func.func @transform_2(%arg0: i32) -> (i32, i32) {
    %c0_i32 = arith.constant 0 : i32
    %c0_i32_0 = arith.constant 0 : i32
    %c0_i32_1 = arith.constant 0 : i32
    return %c0_i32, %c0_i32_0 : i32, i32
  }
  func.func @transform_3(%arg0: i32) -> (i32, i32) {
    %c0_i32 = arith.constant 0 : i32
    %c0_i32_0 = arith.constant 0 : i32
    return %arg0, %c0_i32 : i32, i32
  }
}

</mosaic_0001>

<bundles_post_ra>
// kernel: tpu_custom_call.1
= control target key start
LH: loop header
LB: loop body
LE: loop exit
PB: predicated region body
PF: predicated region fallthrough
CT: control target
= control target key end

     0   :  { %s1194_s0 = inlined_call_operand.hbm [shape: f32[1016,128], index: 0, kind: input, shape index: {}]   ;;  %s1195_s1 = inlined_call_operand.<no memory space> [shape: f32[1,1], index: 1, kind: input, shape index: {}]   ;;  %s1196_s2 = inlined_call_operand.<no memory space> [shape: f32[1,1], index: 2, kind: input, shape index: {}]   ;;  %s1197_s3 = inlined_call_operand.hbm [shape: f32[1016,128], index: 3, kind: output, shape index: {}]  }
   0x1   :  { %8 = sst [smem:[#allocation2]] %s1195_s1 }
   0x2   :  { %9 = sst [smem:[#allocation3]] %s1196_s2 }
   0x3   :  { %10 = vsyncpa [#allocation5], 0 }
   0x4   :  { %12 = vsyncpa [#allocation5 + $0x1], 0 }
   0x5   :  { %13 = vsyncpa [#allocation6], 0 }
   0x6   :  { %15 = vsyncpa [#allocation6 + $0x1], 0  ;;  %s755_s16 = smov 0   ;;  %s757_s17 = smov 0  }
   0x7   :  { %s759_s18 = smov 0   ;;  %s761_s19 = smov 0  }
   0x8 LB: > { %s776_s1 = sadd.s32 4294967295, %s721_s19   ;;  %s560_s2 = sadd.s32 4294967294, %s721_s19   ;;  %s721_s19 = sphi %s761_s19, %s1207_s19   ;;  %s717_s18 = sphi %s759_s18, %s1206_s18   ;;  %s713_s17 = sphi %s757_s17, %s1205_s17   ;;  %s709_s16 = sphi %s755_s16, %s1204_s16  }
   0x9   : > { %s780_s20 = sadd.s32 1, %s721_s19   ;;  %s28_s21 = sadd.s32 1, %s717_s18 }
   0xa   : > { %s25_s22 = ssub.s32 %s721_s19, %s780_s20  ;;  %p35_p0 = scmp.ne.s32.totalorder %s717_s18, %s713_s17 }
   0xb   : > { %p26_p1 = scmp.eq.s32.totalorder %s25_s22, 0  ;;  %p36_p2 = scmp.eq.s32.totalorder %s721_s19, 0 }
   0xc   : > { %p41_p3 = scmp.ne.s32.totalorder %s713_s17, %s709_s16  ;;  %p42_p4 = scmp.eq.s32.totalorder %s776_s1, 0 }
   0xd   : > { %s792_s23 = scalar_select %p26_p1, %s717_s18, %s28_s21  }
   0xe   : > { %p37_p5 = por %p36_p2, %p35_p0  ;;  %p794_p6 = por %p42_p4, %p41_p3 }
   0xf   : > { %p107_p7 = scmp.eq.s32.totalorder %s776_s1, 1  ;;  %p113_p8 = scmp.eq.s32.totalorder %s560_s2, 1 }
  0x10   : > { %p1198_p11 = scmp.ge.s32.totalorder %s721_s19, 2 }
  0x11   : > { %p799_p9 = por %p107_p7, %p35_p0  ;;  %p803_p10 = por %p113_p8, %p41_p3 }
  0x12   : > { %135 = sbr.rel (%p1198_p11) target bundleno = 60 (0x3c), region = 24 }
  0x13   : > { %s1201_s26 = scalar_select %p803_p10, 1, 0 }
  0x19   : > { %138 = sbr.rel (!%p37_p5) target bundleno = 60 (0x3c), region = 28  ;;  %s139_s27 = sand.u32 (%p37_p5), 1, %s717_s18  }
  0x1a   : > { %s564_s28 = sshll.u32 (%p37_p5), %s721_s19, 6  ;;  %s563_s29 = sshll.u32 (%p37_p5), %s139_s27, 9 }
  0x1b   : > { %s145_s30 = ssub.s32 (%p37_p5), 127, %s564_s28  ;;  %s815_s6 = scalar_lea.sflag (%p37_p5), [#allocation5], %s139_s27 }
  0x1c   : > { %p146_p12 = scmp.lt.s32.totalorder (%p37_p5), %s145_s30, 64  ;;  %s143_s7 = scalar_lea.vmem (%p37_p5), [#allocation4], %s563_s29 }
  0x20   : > { %s1209_s30 = smov (!%p146_p12, %s145_s30), 64 }
  0x21   : > { %s812_s4 = sshll.u32 %s1209_s30, 7 }
  0x22   : > { %s150_s5 = ssub.s32 8192, %s812_s4 }
  0x23   : > { %151 = vsyncadd %s815_s6, %s150_s5  ;;  %p566_p13 = scmp.ne.s32.totalorder %s812_s4, 0  ;;  %s582_s8 = sshll.u32 %s721_s19, 13 }
  0x24   : > { %s823_s11 = scalar_lea.hbm %s1194_s0, %s582_s8  ;;  %s156_s12 = sshll.u32 %s143_s7, 4  ;;  %s825_s12 = int_to_ptr.vmem [resolvable:$true] %s156_s12 }
  0x25   : > { %s627_s13 = scalar_lea.hbm %s823_s11, %s812_s4  ;;  %s631_s2 = scalar_lea.hbm %s1194_s0, 16256 }
  0x26   : > { %p628_p0 = scmp.ne.s32.totalorder %s823_s11, %s627_s13  ;;  %p632_p3 = scmp.lt.u32.totalorder %s823_s11, %s1194_s0 }
  0x27   : > { %p633_p4 = scmp.lt.u32.totalorder %s631_s2, %s627_s13  ;;  %p635_p7 = scmp.lt.u32.totalorder %s627_s13, %s823_s11 }
  0x28   : > { %p629_p1 = pnand %p628_p0, %p566_p13 }
  0x29   : > { %p634_p5 = por %p633_p4, %p632_p3 }
  0x2a   : > { %p630_p2 = pneg %p629_p1 }
  0x2b   : > { %p636_p8 = por %p635_p7, %p634_p5 }
  0x2d   : > { %p637_p12 = pnand %p636_p8, %p630_p2 }
  0x2f   : > { %640 = shalt.err (!%p637_p12)
}
  0x30   : > { %s641_s27 = scalar_lea.vmem %s825_s12, %s812_s4  ;;  %s723_s28 = smov [#allocation4]  }
  0x31   : > { %p642_p0 = scmp.ne.s32.totalorder %s825_s12, %s641_s27  ;;  %s645_s29 = sshll.u32 %s723_s28, 4  ;;  %s646_s29 = int_to_ptr.vmem [resolvable:$false] %s645_s29 }
  0x32   : > { %s647_s30 = scalar_lea.vmem %s646_s29, 16384  ;;  %p648_p10 = scmp.lt.s32.totalorder %s825_s12, %s646_s29 }
  0x33   : > { %p643_p1 = pnand %p642_p0, %p566_p13  ;;  %p649_p3 = scmp.lt.s32.totalorder %s647_s30, %s641_s27 }
  0x35   : > { %p644_p11 = pneg %p643_p1  ;;  %p650_p4 = por %p649_p3, %p648_p10 }
  0x37   : > { %p651_p5 = pnand %p650_p4, %p644_p11 }
  0x39   : > { %654 = shalt.err (!%p651_p5)
}
  0x3a   : > { %s724_s5 = smov 128   ;;  %s725_s7 = smov 8  }
  0x3b   : > { %162 = dma.hbm_to_vmem [thread:$0]  (%p566_p13), %s823_s11, %s812_s4, %s825_s12, %s815_s6, %s724_s5, %s724_s5, %s725_s7  }
  0x3c PF: > { %p570_p2 = scmp.ge.s32.totalorder %s721_s19, 1  ;;  %p164_p7 = scmp.lt.s32.totalorder %s721_s19, 3 }
  0x3e   : > { %p165_p8 = pnand %p570_p2, %p164_p7 }
  0x3f   : > { %s855_s8 = sand.u32 (!%p165_p8), 1, %s713_s17  }
  0x40   : > { %168 = sbr.rel (%p165_p8) target bundleno = 149 (0x95), region = 32  ;;  %s571_s9 = sshll.u32 (!%p165_p8), %s855_s8, 9 }
  0x41   : > { %s171_s10 = scalar_lea.sflag (!%p165_p8), [#allocation5], %s855_s8  ;;  %s861_s13 = scalar_lea.vmem (!%p165_p8), [#allocation4], %s571_s9 }
  0x47   : > { %700 = dma.done.wait (%p794_p6), %s171_s10, 8192  }
  0x48   : > { %702 = vsyncadd (%p794_p6), %s171_s10, 4294959104  ;;  %s207_s4 = sld [smem:[#allocation2]]  ;;  %v209_v0 = vld [vmem:[%s861_s13] sm:$0xff]  ;;  %v210_v3 = vld [vmem:[%s861_s13 + $0x8] sm:$0xff]  ;;  %s900_s24 = scalar_lea.vmem [#allocation7], %s571_s9 }
  0x49   : > { %s208_s6 = sld [smem:[#allocation3]]  ;;  %v211_v6 = vld [vmem:[%s861_s13 + $0x10] sm:$0xff]  ;;  %v212_v7 = vld [vmem:[%s861_s13 + $0x18] sm:$0xff]  ;;  %v213_v8 = vld [vmem:[%s861_s13 + $0x20] sm:$0xff]  ;;  %s468_s11 = scalar_lea.sflag [#allocation6], %s855_s8 }
  0x4a   : > { %v214_v12 = vld [vmem:[%s861_s13 + $0x28] sm:$0xff]  ;;  %v215_v13 = vld [vmem:[%s861_s13 + $0x30] sm:$0xff]  ;;  %v216_v14 = vld [vmem:[%s861_s13 + $0x38] sm:$0xff]  ;;  %s574_s12 = sshll.u32 (%p799_p9), %s776_s1, 6 }
  0x4b   : > { %v217_v19 = vld [vmem:[%s861_s13 + $0x40] sm:$0xff]  ;;  %v218_v20 = vld [vmem:[%s861_s13 + $0x48] sm:$0xff]  ;;  %v219_v21 = vld [vmem:[%s861_s13 + $0x50] sm:$0xff]  ;;  %s476_s14 = ssub.s32 (%p799_p9), 127, %s574_s12 }
  0x4c   : > { %v220_v26 = vld [vmem:[%s861_s13 + $0x58] sm:$0xff]  ;;  %v221_v27 = vld [vmem:[%s861_s13 + $0x60] sm:$0xff]  ;;  %v222_v28 = vld [vmem:[%s861_s13 + $0x68] sm:$0xff]  ;;  %p477_p6 = scmp.lt.s32.totalorder (%p799_p9), %s476_s14, 64 }
  0x4d   : > { %v223_v33 = vld [vmem:[%s861_s13 + $0x70] sm:$0xff]  ;;  %v224_v34 = vld [vmem:[%s861_s13 + $0x78] sm:$0xff]  ;;  %v225_v39 = vld [vmem:[%s861_s13 + $0x80] sm:$0xff] }
  0x4e   : > { %v868_v1 = vstv %s207_s4  ;;  %v226_v40 = vld [vmem:[%s861_s13 + $0x88] sm:$0xff]  ;;  %v227_v45 = vld [vmem:[%s861_s13 + $0x90] sm:$0xff]  ;;  %v228_v46 = vld [vmem:[%s861_s13 + $0x98] sm:$0xff] }
  0x4f   : > { %v870_v2 = vstv %s208_s6  ;;  %v274_v4 = vmul.f32 %v868_v1, %v209_v0  ;;  %v275_v5 = vmul.f32 %v868_v1, %v210_v3  ;;  %v276_v9 = vmul.f32 %v868_v1, %v211_v6  ;;  %v229_v47 = vld [vmem:[%s861_s13 + $0xa0] sm:$0xff]  ;;  %v230_v52 = vld [vmem:[%s861_s13 + $0xa8] sm:$0xff]  ;;  %v231_v53 = vld [vmem:[%s861_s13 + $0xb0] sm:$0xff] }
  0x50   : > { %v277_v10 = vmul.f32 %v868_v1, %v212_v7  ;;  %v278_v11 = vmul.f32 %v868_v1, %v213_v8  ;;  %v279_v17 = vmul.f32 %v868_v1, %v214_v12  ;;  %v280_v18 = vmul.f32 %v868_v1, %v215_v13  ;;  %v232_v58 = vld [vmem:[%s861_s13 + $0xb8] sm:$0xff]  ;;  %v233_v63 = vld [vmem:[%s861_s13 + $0xc0] sm:$0xff]  ;;  %v234_v0 = vld [vmem:[%s861_s13 + $0xc8] sm:$0xff] }
  0x51   : > { %v339_v15 = vadd.f32 %v870_v2, %v274_v4  ;;  %v340_v16 = vadd.f32 %v870_v2, %v275_v5  ;;  %v341_v22 = vadd.f32 %v870_v2, %v276_v9  ;;  %v281_v25 = vmul.f32 %v868_v1, %v216_v14  ;;  %v235_v7 = vld [vmem:[%s861_s13 + $0xd0] sm:$0xff]  ;;  %v236_v8 = vld [vmem:[%s861_s13 + $0xd8] sm:$0xff]  ;;  %v237_v9 = vld [vmem:[%s861_s13 + $0xe0] sm:$0xff] }
  0x52   : > { %v342_v23 = vadd.f32 %v870_v2, %v277_v10  ;;  %v343_v24 = vadd.f32 %v870_v2, %v278_v11  ;;  %v344_v29 = vadd.f32 %v870_v2, %v279_v17  ;;  %v345_v30 = vadd.f32 %v870_v2, %v280_v18  ;;  %v238_v14 = vld [vmem:[%s861_s13 + $0xe8] sm:$0xff] }
  0x53   : > { %403 = vst [vmem:[%s900_s24] sm:$0xff] %v339_v15  ;;  %404 = vst [vmem:[%s900_s24 + $0x8] sm:$0xff] %v340_v16  ;;  %v282_v31 = vmul.f32 %v868_v1, %v217_v19  ;;  %v283_v32 = vmul.f32 %v868_v1, %v218_v20  ;;  %v346_v35 = vadd.f32 %v870_v2, %v281_v25  ;;  %v239_v15 = vld [vmem:[%s861_s13 + $0xf0] sm:$0xff]  ;;  %v240_v20 = vld [vmem:[%s861_s13 + $0xf8] sm:$0xff] }
  0x54   : > { %405 = vst [vmem:[%s900_s24 + $0x10] sm:$0xff] %v341_v22  ;;  %406 = vst [vmem:[%s900_s24 + $0x18] sm:$0xff] %v342_v23  ;;  %v284_v36 = vmul.f32 %v868_v1, %v219_v21  ;;  %v285_v37 = vmul.f32 %v868_v1, %v220_v26  ;;  %v286_v38 = vmul.f32 %v868_v1, %v221_v27  ;;  %v241_v25 = vld [vmem:[%s861_s13 + $0x100] sm:$0xff]  ;;  %v242_v26 = vld [vmem:[%s861_s13 + $0x108] sm:$0xff] }
  0x55   : > { %407 = vst [vmem:[%s900_s24 + $0x20] sm:$0xff] %v343_v24  ;;  %408 = vst [vmem:[%s900_s24 + $0x28] sm:$0xff] %v344_v29  ;;  %v347_v41 = vadd.f32 %v870_v2, %v282_v31  ;;  %v348_v42 = vadd.f32 %v870_v2, %v283_v32  ;;  %v287_v43 = vmul.f32 %v868_v1, %v222_v28  ;;  %v243_v31 = vld [vmem:[%s861_s13 + $0x110] sm:$0xff]  ;;  %v244_v32 = vld [vmem:[%s861_s13 + $0x118] sm:$0xff] }
  0x56   : > { %409 = vst [vmem:[%s900_s24 + $0x30] sm:$0xff] %v345_v30  ;;  %v288_v44 = vmul.f32 %v868_v1, %v223_v33  ;;  %410 = vst [vmem:[%s900_s24 + $0x38] sm:$0xff] %v346_v35  ;;  %v349_v48 = vadd.f32 %v870_v2, %v284_v36  ;;  %v350_v49 = vadd.f32 %v870_v2, %v285_v37  ;;  %v245_v33 = vld [vmem:[%s861_s13 + $0x120] sm:$0xff] }
  0x57   : > { %v351_v50 = vadd.f32 %v870_v2, %v286_v38  ;;  %v289_v51 = vmul.f32 %v868_v1, %v224_v34  ;;  %411 = vst [vmem:[%s900_s24 + $0x40] sm:$0xff] %v347_v41  ;;  %412 = vst [vmem:[%s900_s24 + $0x48] sm:$0xff] %v348_v42  ;;  %v352_v54 = vadd.f32 %v870_v2, %v287_v43  ;;  %v246_v38 = vld [vmem:[%s861_s13 + $0x128] sm:$0xff] }
  0x58   : > { %v353_v55 = vadd.f32 %v870_v2, %v288_v44  ;;  %v290_v56 = vmul.f32 %v868_v1, %v225_v39  ;;  %v291_v57 = vmul.f32 %v868_v1, %v226_v40  ;;  %413 = vst [vmem:[%s900_s24 + $0x50] sm:$0xff] %v349_v48  ;;  %414 = vst [vmem:[%s900_s24 + $0x58] sm:$0xff] %v350_v49  ;;  %v247_v39 = vld [vmem:[%s861_s13 + $0x130] sm:$0xff]  ;;  %v248_v44 = vld [vmem:[%s861_s13 + $0x138] sm:$0xff] }
  0x59   : > { %415 = vst [vmem:[%s900_s24 + $0x60] sm:$0xff] %v351_v50  ;;  %v354_v59 = vadd.f32 %v870_v2, %v289_v51  ;;  %v292_v60 = vmul.f32 %v868_v1, %v227_v45  ;;  %v293_v61 = vmul.f32 %v868_v1, %v228_v46  ;;  %v294_v62 = vmul.f32 %v868_v1, %v229_v47  ;;  %v249_v49 = vld [vmem:[%s861_s13 + $0x140] sm:$0xff]  ;;  %v250_v50 = vld [vmem:[%s861_s13 + $0x148] sm:$0xff] }
  0x5a   : > { %416 = vst [vmem:[%s900_s24 + $0x68] sm:$0xff] %v352_v54  ;;  %417 = vst [vmem:[%s900_s24 + $0x70] sm:$0xff] %v353_v55  ;;  %v355_v3 = vadd.f32 %v870_v2, %v290_v56  ;;  %v356_v4 = vadd.f32 %v870_v2, %v291_v57  ;;  %v295_v5 = vmul.f32 %v868_v1, %v230_v52  ;;  %v251_v55 = vld [vmem:[%s861_s13 + $0x150] sm:$0xff]  ;;  %v252_v56 = vld [vmem:[%s861_s13 + $0x158] sm:$0xff] }
  0x5b   : > { %v296_v6 = vmul.f32 %v868_v1, %v231_v53  ;;  %418 = vst [vmem:[%s900_s24 + $0x78] sm:$0xff] %v354_v59  ;;  %v357_v10 = vadd.f32 %v870_v2, %v292_v60  ;;  %v358_v11 = vadd.f32 %v870_v2, %v293_v61  ;;  %v359_v12 = vadd.f32 %v870_v2, %v294_v62  ;;  %v253_v57 = vld [vmem:[%s861_s13 + $0x160] sm:$0xff]  ;;  %v254_v62 = vld [vmem:[%s861_s13 + $0x168] sm:$0xff] }
  0x5c   : > { %v297_v13 = vmul.f32 %v868_v1, %v232_v58  ;;  %419 = vst [vmem:[%s900_s24 + $0x80] sm:$0xff] %v355_v3  ;;  %420 = vst [vmem:[%s900_s24 + $0x88] sm:$0xff] %v356_v4  ;;  %v360_v16 = vadd.f32 %v870_v2, %v295_v5  ;;  %v298_v18 = vmul.f32 %v868_v1, %v233_v63  ;;  %v255_v63 = vld [vmem:[%s861_s13 + $0x170] sm:$0xff] }
  0x5d   : > { %v361_v17 = vadd.f32 %v870_v2, %v296_v6  ;;  %v299_v19 = vmul.f32 %v868_v1, %v234_v0  ;;  %421 = vst [vmem:[%s900_s24 + $0x90] sm:$0xff] %v357_v10  ;;  %422 = vst [vmem:[%s900_s24 + $0x98] sm:$0xff] %v358_v11  ;;  %v300_v22 = vmul.f32 %v868_v1, %v235_v7  ;;  %v256_v6 = vld [vmem:[%s861_s13 + $0x178] sm:$0xff]  ;;  %v257_v11 = vld [vmem:[%s861_s13 + $0x180] sm:$0xff] }
  0x5e   : > { %423 = vst [vmem:[%s900_s24 + $0xa0] sm:$0xff] %v359_v12  ;;  %v362_v21 = vadd.f32 %v870_v2, %v297_v13  ;;  %v301_v23 = vmul.f32 %v868_v1, %v236_v8  ;;  %v302_v24 = vmul.f32 %v868_v1, %v237_v9  ;;  %424 = vst [vmem:[%s900_s24 + $0xa8] sm:$0xff] %v360_v16  ;;  %v258_v12 = vld [vmem:[%s861_s13 + $0x188] sm:$0xff] }
  0x5f   : > { %425 = vst [vmem:[%s900_s24 + $0xb0] sm:$0xff] %v361_v17  ;;  %v363_v27 = vadd.f32 %v870_v2, %v298_v18  ;;  %v364_v28 = vadd.f32 %v870_v2, %v299_v19  ;;  %v303_v29 = vmul.f32 %v868_v1, %v238_v14  ;;  %v304_v30 = vmul.f32 %v868_v1, %v239_v15  ;;  %v259_v17 = vld [vmem:[%s861_s13 + $0x190] sm:$0xff]  ;;  %v260_v18 = vld [vmem:[%s861_s13 + $0x198] sm:$0xff]  ;;  %v261_v19 = vld [vmem:[%s861_s13 + $0x1a0] sm:$0xff] }
  0x60   : > { %426 = vst [vmem:[%s900_s24 + $0xb8] sm:$0xff] %v362_v21  ;;  %v365_v34 = vadd.f32 %v870_v2, %v300_v22  ;;  %v366_v35 = vadd.f32 %v870_v2, %v301_v23  ;;  %v367_v36 = vadd.f32 %v870_v2, %v302_v24  ;;  %v305_v37 = vmul.f32 %v868_v1, %v240_v20  ;;  %v262_v24 = vld [vmem:[%s861_s13 + $0x1a8] sm:$0xff] }
  0x61   : > { %427 = vst [vmem:[%s900_s24 + $0xc0] sm:$0xff] %v363_v27  ;;  %428 = vst [vmem:[%s900_s24 + $0xc8] sm:$0xff] %v364_v28  ;;  %v368_v40 = vadd.f32 %v870_v2, %v303_v29  ;;  %v369_v41 = vadd.f32 %v870_v2, %v304_v30  ;;  %v306_v42 = vmul.f32 %v868_v1, %v241_v25  ;;  %v263_v25 = vld [vmem:[%s861_s13 + $0x1b0] sm:$0xff]  ;;  %v264_v30 = vld [vmem:[%s861_s13 + $0x1b8] sm:$0xff] }
  0x62   : > { %v307_v43 = vmul.f32 %v868_v1, %v242_v26  ;;  %429 = vst [vmem:[%s900_s24 + $0xd0] sm:$0xff] %v365_v34  ;;  %430 = vst [vmem:[%s900_s24 + $0xd8] sm:$0xff] %v366_v35  ;;  %v370_v45 = vadd.f32 %v870_v2, %v305_v37  ;;  %v308_v46 = vmul.f32 %v868_v1, %v243_v31  ;;  %v265_v35 = vld [vmem:[%s861_s13 + $0x1c0] sm:$0xff] }
  0x63   : > { %431 = vst [vmem:[%s900_s24 + $0xe0] sm:$0xff] %v367_v36  ;;  %v309_v47 = vmul.f32 %v868_v1, %v244_v32  ;;  %v310_v48 = vmul.f32 %v868_v1, %v245_v33  ;;  %432 = vst [vmem:[%s900_s24 + $0xe8] sm:$0xff] %v368_v40  ;;  %v371_v51 = vadd.f32 %v870_v2, %v306_v42  ;;  %v266_v36 = vld [vmem:[%s861_s13 + $0x1c8] sm:$0xff]  ;;  %v268_v42 = vld [vmem:[%s861_s13 + $0x1d8] sm:$0xff] }
  0x64   : > { %433 = vst [vmem:[%s900_s24 + $0xf0] sm:$0xff] %v369_v41  ;;  %v372_v52 = vadd.f32 %v870_v2, %v307_v43  ;;  %v311_v53 = vmul.f32 %v868_v1, %v246_v38  ;;  %v312_v54 = vmul.f32 %v868_v1, %v247_v39  ;;  %434 = vst [vmem:[%s900_s24 + $0xf8] sm:$0xff] %v370_v45  ;;  %v267_v41 = vld [vmem:[%s861_s13 + $0x1d0] sm:$0xff]  ;;  %v269_v43 = vld [vmem:[%s861_s13 + $0x1e0] sm:$0xff] }
  0x65   : > { %v373_v58 = vadd.f32 %v870_v2, %v308_v46  ;;  %v374_v59 = vadd.f32 %v870_v2, %v309_v47  ;;  %v375_v60 = vadd.f32 %v870_v2, %v310_v48  ;;  %v313_v61 = vmul.f32 %v868_v1, %v248_v44  ;;  %435 = vst [vmem:[%s900_s24 + $0x100] sm:$0xff] %v371_v51  ;;  %v270_v48 = vld [vmem:[%s861_s13 + $0x1e8] sm:$0xff] }
  0x66   : > { %436 = vst [vmem:[%s900_s24 + $0x108] sm:$0xff] %v372_v52  ;;  %v376_v0 = vadd.f32 %v870_v2, %v311_v53  ;;  %v377_v3 = vadd.f32 %v870_v2, %v312_v54  ;;  %v314_v4 = vmul.f32 %v868_v1, %v249_v49  ;;  %v315_v5 = vmul.f32 %v868_v1, %v250_v50  ;;  %v271_v49 = vld [vmem:[%s861_s13 + $0x1f0] sm:$0xff]  ;;  %v272_v54 = vld [vmem:[%s861_s13 + $0x1f8] sm:$0xff] }
  0x67   : > { %437 = vst [vmem:[%s900_s24 + $0x110] sm:$0xff] %v373_v58  ;;  %438 = vst [vmem:[%s900_s24 + $0x118] sm:$0xff] %v374_v59  ;;  %v378_v7 = vadd.f32 %v870_v2, %v313_v61  ;;  %v316_v8 = vmul.f32 %v868_v1, %v251_v55  ;;  %v317_v9 = vmul.f32 %v868_v1, %v252_v56 }
  0x68   : > { %439 = vst [vmem:[%s900_s24 + $0x120] sm:$0xff] %v375_v60  ;;  %v318_v10 = vmul.f32 %v868_v1, %v253_v57  ;;  %440 = vst [vmem:[%s900_s24 + $0x128] sm:$0xff] %v376_v0  ;;  %v379_v13 = vadd.f32 %v870_v2, %v314_v4  ;;  %v380_v14 = vadd.f32 %v870_v2, %v315_v5 }
  0x69   : > { %441 = vst [vmem:[%s900_s24 + $0x130] sm:$0xff] %v377_v3  ;;  %v319_v15 = vmul.f32 %v868_v1, %v254_v62  ;;  %v320_v16 = vmul.f32 %v868_v1, %v255_v63  ;;  %442 = vst [vmem:[%s900_s24 + $0x138] sm:$0xff] %v378_v7  ;;  %v381_v20 = vadd.f32 %v870_v2, %v316_v8 }
  0x6a   : > { %v382_v21 = vadd.f32 %v870_v2, %v317_v9  ;;  %v383_v22 = vadd.f32 %v870_v2, %v318_v10  ;;  %v321_v23 = vmul.f32 %v868_v1, %v256_v6  ;;  %443 = vst [vmem:[%s900_s24 + $0x140] sm:$0xff] %v379_v13  ;;  %444 = vst [vmem:[%s900_s24 + $0x148] sm:$0xff] %v380_v14 }
  0x6b   : > { %v384_v26 = vadd.f32 %v870_v2, %v319_v15  ;;  %v385_v27 = vadd.f32 %v870_v2, %v320_v16  ;;  %v322_v28 = vmul.f32 %v868_v1, %v257_v11  ;;  %v323_v29 = vmul.f32 %v868_v1, %v258_v12  ;;  %445 = vst [vmem:[%s900_s24 + $0x150] sm:$0xff] %v381_v20 }
  0x6c   : > { %446 = vst [vmem:[%s900_s24 + $0x158] sm:$0xff] %v382_v21  ;;  %447 = vst [vmem:[%s900_s24 + $0x160] sm:$0xff] %v383_v22  ;;  %v386_v31 = vadd.f32 %v870_v2, %v321_v23  ;;  %v324_v32 = vmul.f32 %v868_v1, %v259_v17  ;;  %v325_v33 = vmul.f32 %v868_v1, %v260_v18 }
  0x6d   : > { %v326_v34 = vmul.f32 %v868_v1, %v261_v19  ;;  %448 = vst [vmem:[%s900_s24 + $0x168] sm:$0xff] %v384_v26  ;;  %449 = vst [vmem:[%s900_s24 + $0x170] sm:$0xff] %v385_v27  ;;  %v387_v37 = vadd.f32 %v870_v2, %v322_v28  ;;  %v388_v38 = vadd.f32 %v870_v2, %v323_v29 }
  0x6e   : > { %v327_v39 = vmul.f32 %v868_v1, %v262_v24  ;;  %v328_v40 = vmul.f32 %v868_v1, %v263_v25  ;;  %450 = vst [vmem:[%s900_s24 + $0x178] sm:$0xff] %v386_v31  ;;  %v389_v44 = vadd.f32 %v870_v2, %v324_v32  ;;  %v390_v45 = vadd.f32 %v870_v2, %v325_v33 }
  0x6f   : > { %v391_v46 = vadd.f32 %v870_v2, %v326_v34  ;;  %v329_v47 = vmul.f32 %v868_v1, %v264_v30  ;;  %451 = vst [vmem:[%s900_s24 + $0x180] sm:$0xff] %v387_v37  ;;  %452 = vst [vmem:[%s900_s24 + $0x188] sm:$0xff] %v388_v38  ;;  %v330_v52 = vmul.f32 %v868_v1, %v265_v35 }
  0x70   : > { %v392_v50 = vadd.f32 %v870_v2, %v327_v39  ;;  %v393_v51 = vadd.f32 %v870_v2, %v328_v40  ;;  %v331_v53 = vmul.f32 %v868_v1, %v266_v36  ;;  %453 = vst [vmem:[%s900_s24 + $0x190] sm:$0xff] %v389_v44  ;;  %454 = vst [vmem:[%s900_s24 + $0x198] sm:$0xff] %v390_v45 }
  0x71   : > { %455 = vst [vmem:[%s900_s24 + $0x1a0] sm:$0xff] %v391_v46  ;;  %v394_v55 = vadd.f32 %v870_v2, %v329_v47  ;;  %v332_v56 = vmul.f32 %v868_v1, %v267_v41  ;;  %v333_v57 = vmul.f32 %v868_v1, %v268_v42  ;;  %v334_v58 = vmul.f32 %v868_v1, %v269_v43 }
  0x72   : > { %456 = vst [vmem:[%s900_s24 + $0x1a8] sm:$0xff] %v392_v50  ;;  %457 = vst [vmem:[%s900_s24 + $0x1b0] sm:$0xff] %v393_v51  ;;  %v395_v59 = vadd.f32 %v870_v2, %v330_v52  ;;  %v396_v60 = vadd.f32 %v870_v2, %v331_v53  ;;  %v335_v61 = vmul.f32 %v868_v1, %v270_v48  ;;  %474 = sbr.rel (!%p799_p9) target bundleno = 149 (0x95), region = 40 }
  0x73   : > { %v336_v62 = vmul.f32 %v868_v1, %v271_v49  ;;  %458 = vst [vmem:[%s900_s24 + $0x1b8] sm:$0xff] %v394_v55  ;;  %v397_v63 = vadd.f32 %v870_v2, %v332_v56  ;;  %v398_v0 = vadd.f32 %v870_v2, %v333_v57  ;;  %v399_v3 = vadd.f32 %v870_v2, %v334_v58 }
  0x74   : > { %v337_v4 = vmul.f32 %v868_v1, %v272_v54  ;;  %459 = vst [vmem:[%s900_s24 + $0x1c0] sm:$0xff] %v395_v59  ;;  %460 = vst [vmem:[%s900_s24 + $0x1c8] sm:$0xff] %v396_v60  ;;  %v400_v5 = vadd.f32 %v870_v2, %v335_v61 }
  0x75   : > { %v401_v6 = vadd.f32 %v870_v2, %v336_v62  ;;  %461 = vst [vmem:[%s900_s24 + $0x1d0] sm:$0xff] %v397_v63  ;;  %462 = vst [vmem:[%s900_s24 + $0x1d8] sm:$0xff] %v398_v0 }
  0x76   : > { %463 = vst [vmem:[%s900_s24 + $0x1e0] sm:$0xff] %v399_v3  ;;  %v402_v7 = vadd.f32 %v870_v2, %v337_v4  ;;  %464 = vst [vmem:[%s900_s24 + $0x1e8] sm:$0xff] %v400_v5 }
  0x77   : > { %465 = vst [vmem:[%s900_s24 + $0x1f0] sm:$0xff] %v401_v6 }
  0x78   : > { %466 = vst [vmem:[%s900_s24 + $0x1f8] sm:$0xff] %v402_v7 }
  0x79   : > { %s1211_s14 = smov (!%p477_p6, %s476_s14), 64 }
  0x7a   : > { %s1135_s15 = sshll.u32 %s1211_s14, 7 }
  0x7b   : > { %s481_s2 = ssub.s32 8192, %s1135_s15 }
  0x7c   : > { %482 = vsyncadd %s468_s11, %s481_s2  ;;  %p576_p10 = scmp.ne.s32.totalorder %s1135_s15, 0  ;;  %s583_s25 = sshll.u32 %s776_s1, 13 }
  0x7d   : > { %s1145_s27 = scalar_lea.hbm %s1197_s3, %s583_s25  ;;  %s487_s28 = sshll.u32 %s900_s24, 4  ;;  %s1148_s28 = int_to_ptr.vmem [resolvable:$true] %s487_s28 }
  0x7e   : > { %s655_s29 = scalar_lea.vmem %s1148_s28, %s1135_s15  ;;  %s726_s30 = smov [#allocation7]  }
  0x7f   : > { %p656_p9 = scmp.ne.s32.totalorder %s1148_s28, %s655_s29  ;;  %s659_s5 = sshll.u32 %s726_s30, 4  ;;  %s660_s5 = int_to_ptr.vmem [resolvable:$false] %s659_s5 }
  0x80   : > { %s661_s1 = scalar_lea.vmem %s660_s5, 16384  ;;  %p662_p12 = scmp.lt.s32.totalorder %s1148_s28, %s660_s5 }
  0x81   : > { %p657_p11 = pnand %p656_p9, %p576_p10  ;;  %p663_p0 = scmp.lt.s32.totalorder %s661_s1, %s655_s29 }
  0x83   : > { %p658_p13 = pneg %p657_p11  ;;  %p664_p1 = por %p663_p0, %p662_p12 }
  0x85   : > { %p665_p3 = pnand %p664_p1, %p658_p13 }
  0x87   : > { %668 = shalt.err (!%p665_p3)
}
  0x88   : > { %s669_s7 = scalar_lea.hbm %s1145_s27, %s1135_s15  ;;  %s673_s13 = scalar_lea.hbm %s1197_s3, 16256 }
  0x89   : > { %p670_p4 = scmp.ne.s32.totalorder %s1145_s27, %s669_s7  ;;  %p674_p7 = scmp.lt.u32.totalorder %s1145_s27, %s1197_s3 }
  0x8a   : > { %p675_p8 = scmp.lt.u32.totalorder %s673_s13, %s669_s7  ;;  %p677_p9 = scmp.lt.u32.totalorder %s669_s7, %s1145_s27 }
  0x8b   : > { %p671_p5 = pnand %p670_p4, %p576_p10 }
  0x8c   : > { %p676_p6 = por %p675_p8, %p674_p7 }
  0x8d   : > { %p672_p2 = pneg %p671_p5 }
  0x8e   : > { %p678_p11 = por %p677_p9, %p676_p6 }
  0x90   : > { %p679_p13 = pnand %p678_p11, %p672_p2 }
  0x92   : > { %682 = shalt.err (!%p679_p13)
}
  0x93   : > { %s727_s24 = smov 128   ;;  %s728_s12 = smov 8  }
  0x94   : > { %493 = dma.vmem_to_hbm [thread:$0]  (%p576_p10), %s1148_s28, %s1135_s15, %s1145_s27, %s468_s11, %s727_s24, %s727_s24, %s728_s12  }
  0x95 PF: > { %s502_s14 = sand.u32 1, %s709_s16   ;;  %p1202_p12 = scmp.ne.s32.totalorder %s1201_s26, 0 }
  0x96   : > { %p1203_p0 = scmp.ge.s32.totalorder %s721_s19, 2  ;;  %s503_s2 = scalar_lea.sflag [#allocation6], %s502_s14 }
  0x98   : > { %p587_p1 = pnand %p1203_p0, %p1202_p12 }
  0x9a   : > { %704 = dma.done.wait (!%p587_p1), %s503_s2, 8192  }
  0x9b   : > { %706 = vsyncadd (!%p587_p1), %s503_s2, 4294959104  ;;  %p18_p3 = scmp.ge.s32.totalorder %s780_s20, 4   ;;  %s1204_s16 = smov %s713_s17 }
  0x9c   : > { %s1205_s17 = smov %s717_s18  ;;  %s1206_s18 = smov %s792_s23 }
  0x9d   : > { %s1207_s19 = smov %s780_s20  ;;  %20 = sbr.rel (!%p18_p3) target bundleno = 8 (0x8), region = 77 }
  0xa4   :  { %508 = vsyncpa [#allocation5], 1 }
  0xa5   :  { %510 = vsyncpa [#allocation5 + $0x1], 1 }
  0xa6   :  { %511 = vsyncpa [#allocation6], 1 }
  0xa7   :  { %513 = vsyncpa [#allocation6 + $0x1], 1 }

</bundles_post_ra>
